<compile_context>
chip_gen: v6e
topology: v6e:2x2x1
jax: 0.10.0
libtpu: 0.0.40
codegen_flags: <defaults>
</compile_context>

<pallas_src>
import functools

import jax
import jax.numpy as jnp
from jax.experimental import pallas as pl
from jax.experimental.pallas import tpu as pltpu


def _round_up(n: int, m: int) -> int:
    return (n + m - 1) // m * m


def _mlp_kernel(x_ref, w1_ref, b1_ref, w2_ref, b2_ref, w3_ref, b3_ref, o_ref):
    # Fused 3-layer MLP for one batch tile. x arrives as f32 straight from HBM
    # and is cast to bf16 on-chip (MXU fast path); accumulation is f32
    # (preferred_element_type) and bias-add / ReLU stay f32 on the VPU
    # (safe on v5e which has no bf16 VALU).
    x = x_ref[...].astype(jnp.bfloat16)                                # (bb, 784)
    h1 = jnp.dot(x, w1_ref[...], preferred_element_type=jnp.float32) + b1_ref[...]
    h1 = jnp.maximum(h1, 0.0).astype(jnp.bfloat16)                     # (bb, 128)
    h2 = jnp.dot(h1, w2_ref[...], preferred_element_type=jnp.float32) + b2_ref[...]
    h2 = jnp.maximum(h2, 0.0).astype(jnp.bfloat16)                     # (bb, 128)
    out = jnp.dot(h2, w3_ref[...], preferred_element_type=jnp.float32) + b3_ref[...]
    o_ref[...] = out.astype(o_ref.dtype)                               # (bb, 128) f32


@functools.partial(jax.jit, static_argnames=("block_b",))
def mlp_forward(x, params, *, block_b=1024):
    """x: [B, 1, 28, 28] (or [B, 28, 28]); returns logits [B, 10] (f32)."""
    w1, b1, w2, b2, w3, b3 = params
    B = x.shape[0]
    in_dim = 28 * 28
    flat = x.reshape(B, in_dim)
    if flat.dtype != jnp.float32:
        flat = flat.astype(jnp.float32)

    h = w1.shape[1]
    h2 = w2.shape[1]
    out_dim = w3.shape[1]

    # Lane-dense widths for the hidden / output dims (full vst/vld, no masked
    # VPU lanes, better MXU column fill).
    hp = _round_up(h, 128)        # 64  -> 128
    h2p = _round_up(h2, 128)      # 32  -> 128
    out_pad = _round_up(out_dim, 128)  # 10 -> 128

    # Batch tile: 16-aligned (bf16 sublane pairs). Tiny batches -> one step;
    # otherwise guarantee >= 2 grid steps so "parallel" sharding can use both
    # v7x TensorCores, capped at block_b.
    if _round_up(B, 16) <= 32:
        bb = _round_up(B, 16)
    else:
        bb = min(block_b, _round_up(-(-B // 2), 16))
    grid = (pl.cdiv(B, bb),)

    # Weight / bias padding to lane-dense widths (tiny arrays; pad is free and
    # mathematically inert: padded biases are 0, padded weight rows are 0).
    w1_p = jnp.pad(w1.astype(jnp.bfloat16), ((0, 0), (0, hp - h)))
    b1_p = jnp.pad(b1.astype(jnp.float32), ((0, 0), (0, hp - h)))
    w2_p = jnp.pad(w2.astype(jnp.bfloat16), ((0, hp - h), (0, h2p - h2)))
    b2_p = jnp.pad(b2.astype(jnp.float32), ((0, 0), (0, h2p - h2)))
    w3_p = jnp.pad(w3.astype(jnp.bfloat16), ((0, h2p - h2), (0, out_pad - out_dim)))
    b3_p = jnp.pad(b3.astype(jnp.float32), ((0, 0), (0, out_pad - out_dim)))

    # x is tiled over the batch only; weights/biases use full-array blocks.
    in_specs = [
        pl.BlockSpec((bb, in_dim), lambda i: (i, 0)),      # x tile, f32, K=784 unpadded
        pl.BlockSpec((in_dim, hp), lambda i: (0, 0)),      # W1 (bf16)
        pl.BlockSpec((1, hp), lambda i: (0, 0)),           # b1 (f32)
        pl.BlockSpec((hp, h2p), lambda i: (0, 0)),         # W2 (bf16)
        pl.BlockSpec((1, h2p), lambda i: (0, 0)),          # b2 (f32)
        pl.BlockSpec((h2p, out_pad), lambda i: (0, 0)),    # W3 (bf16, 128 lanes)
        pl.BlockSpec((1, out_pad), lambda i: (0, 0)),      # b3 (f32, 128 lanes)
    ]
    out_spec = pl.BlockSpec((bb, out_pad), lambda i: (i, 0))

    weight_bytes = ((in_dim * hp + hp * h2p + h2p * out_pad) * 2
                    + (hp + h2p + out_pad) * 4)
    # Double-buffered x/out tiles + double-buffered weights + headroom for the
    # f32/bf16 intermediates; capped at 32 MiB (v7x has 64 MiB VMEM per TC).
    vmem_bytes = (2 * bb * in_dim * 4 + 2 * bb * out_pad * 4
                  + 2 * weight_bytes + (6 << 20))
    vmem_bytes = min(int(vmem_bytes), 32 * 1024 * 1024)

    cost = pl.CostEstimate(
        flops=2 * B * (in_dim * hp + hp * h2p + h2p * out_pad),
        transcendentals=0,
        bytes_accessed=B * in_dim * 4 + B * out_pad * 4 + weight_bytes,
    )

    out_padded = pl.pallas_call(
        _mlp_kernel,
        out_shape=jax.ShapeDtypeStruct((B, out_pad), jnp.float32),
        grid_spec=pltpu.PrefetchScalarGridSpec(
            num_scalar_prefetch=0,
            grid=grid,
            in_specs=in_specs,
            out_specs=out_spec,
        ),
        compiler_params=pltpu.CompilerParams(
            dimension_semantics=("parallel",),   # shard batch steps across TCs (v7x)
            vmem_limit_bytes=vmem_bytes,
        ),
        cost_estimate=cost,
    )(flat, w1_p, b1_p, w2_p, b2_p, w3_p, b3_p)

    # Keep the padded 128-lane block inside the kernel for unmasked vst; only
    # the real 10 logit columns are returned.
    return out_padded[:, :out_dim]


def init_params(key, hidden_width):
    """Deterministic parameter init matching nn.Linear shapes, stored as (in, out)."""
    dims = [(28 * 28, hidden_width),
            (hidden_width, hidden_width // 2),
            (hidden_width // 2, 10)]
    params = []
    for fan_in, fan_out in dims:
        kw, kb, key = jax.random.split(key, 3)
        bound = 1.0 / jnp.sqrt(fan_in)
        w = jax.random.uniform(kw, (fan_in, fan_out), jnp.float32, -bound, bound)
        b = jax.random.uniform(kb, (1, fan_out), jnp.float32, -bound, bound)
        params += [w, b]
    return tuple(params)


if __name__ == "__main__":
    key = jax.random.PRNGKey(0)
    kx, kp = jax.random.split(key)

    hidden_width = 64          # layers: 784 -> 64 -> 32 -> 10
    batch = 8                  # small demo batch; kernel tiles up to block_b

    x = jax.random.normal(kx, (batch, 1, 28, 28), dtype=jnp.float32)  # NCHW
    params = init_params(kp, hidden_width)

    logits = mlp_forward(x, params, block_b=1024)
    jax.block_until_ready(logits)
    assert logits.shape == (batch, 10), logits.shape

    # Reference check against plain f32 JAX (same math as the PyTorch module).
    # bf16 matmul inputs (with f32 accumulation) give ~1e-3-level deviations,
    # so use a loose-but-meaningful absolute tolerance.
    w1, b1, w2, b2, w3, b3 = params
    flat = x.reshape(batch, 28 * 28)
    ref = jnp.maximum(flat @ w1 + b1, 0.0)
    ref = jnp.maximum(ref @ w2 + b2, 0.0)
    ref = ref @ w3 + b3
    max_err = float(jnp.max(jnp.abs(logits - ref)))
    assert max_err < 5e-2, f"max abs err {max_err}"

    print("KERNEL_OK")
</pallas_src>

<mosaic_0001>
module attributes {stable_mosaic.version = 11 : i64} {
  func.func @_mlp_kernel(%arg0: i32, %arg1: memref<16x784xf32, #tpu.memory_space<vmem>>, %arg2: memref<784x128xbf16, #tpu.memory_space<vmem>>, %arg3: memref<1x128xf32, #tpu.memory_space<vmem>>, %arg4: memref<128x128xbf16, #tpu.memory_space<vmem>>, %arg5: memref<1x128xf32, #tpu.memory_space<vmem>>, %arg6: memref<128x128xbf16, #tpu.memory_space<vmem>>, %arg7: memref<1x128xf32, #tpu.memory_space<vmem>>, %arg8: memref<16x128xf32, #tpu.memory_space<vmem>>) attributes {dimension_semantics = [#tpu.dimension_semantics<parallel>], iteration_bounds = array<i64: 1>, scalar_prefetch = 0 : i64, scratch_operands = 0 : i64, tpu.core_type = #tpu.core_type<tc>, window_params = [{transform_indices = @transform_0, window_bounds = array<i64: 16, 784>}, {pipeline_mode = #tpu.pipeline_mode<synchronous>, transform_indices = @transform_1, window_bounds = array<i64: 784, 128>}, {pipeline_mode = #tpu.pipeline_mode<synchronous>, transform_indices = @transform_2, window_bounds = array<i64: 1, 128>}, {pipeline_mode = #tpu.pipeline_mode<synchronous>, transform_indices = @transform_3, window_bounds = array<i64: 128, 128>}, {pipeline_mode = #tpu.pipeline_mode<synchronous>, transform_indices = @transform_4, window_bounds = array<i64: 1, 128>}, {pipeline_mode = #tpu.pipeline_mode<synchronous>, transform_indices = @transform_5, window_bounds = array<i64: 128, 128>}, {pipeline_mode = #tpu.pipeline_mode<synchronous>, transform_indices = @transform_6, window_bounds = array<i64: 1, 128>}, {transform_indices = @transform_7, window_bounds = array<i64: 16, 128>}]} {
    %c0 = arith.constant 0 : index
    %c0_0 = arith.constant 0 : index
    %0 = vector.load %arg1[%c0, %c0_0] : memref<16x784xf32, #tpu.memory_space<vmem>>, vector<16x784xf32>
    %1 = arith.truncf %0 : vector<16x784xf32> to vector<16x784xbf16>
    %c0_1 = arith.constant 0 : index
    %c0_2 = arith.constant 0 : index
    %2 = vector.load %arg2[%c0_1, %c0_2] : memref<784x128xbf16, #tpu.memory_space<vmem>>, vector<784x128xbf16>
    %cst = arith.constant dense<0.000000e+00> : vector<16x128xf32>
    %3 = tpu.matmul %1, %2, %cst {dimension_numbers = #tpu.dot_dimension_numbers<[1], [0], [0], [1], [0, 0, 1, 1], [], []>} : vector<16x784xbf16>, vector<784x128xbf16>, vector<16x128xf32> -> vector<16x128xf32>
    %c0_3 = arith.constant 0 : index
    %c0_4 = arith.constant 0 : index
    %4 = vector.load %arg3[%c0_3, %c0_4] : memref<1x128xf32, #tpu.memory_space<vmem>>, vector<1x128xf32>
    %5 = vector.broadcast %4 : vector<1x128xf32> to vector<16x128xf32>
    %6 = arith.addf %3, %5 : vector<16x128xf32>
    %cst_5 = arith.constant 0.000000e+00 : f32
    %7 = vector.broadcast %cst_5 : f32 to vector<16x128xf32>
    %8 = arith.maximumf %6, %7 : vector<16x128xf32>
    %9 = arith.truncf %8 : vector<16x128xf32> to vector<16x128xbf16>
    %c0_6 = arith.constant 0 : index
    %c0_7 = arith.constant 0 : index
    %10 = vector.load %arg4[%c0_6, %c0_7] : memref<128x128xbf16, #tpu.memory_space<vmem>>, vector<128x128xbf16>
    %cst_8 = arith.constant dense<0.000000e+00> : vector<16x128xf32>
    %11 = tpu.matmul %9, %10, %cst_8 {dimension_numbers = #tpu.dot_dimension_numbers<[1], [0], [0], [1], [0, 0, 1, 1], [], []>} : vector<16x128xbf16>, vector<128x128xbf16>, vector<16x128xf32> -> vector<16x128xf32>
    %c0_9 = arith.constant 0 : index
    %c0_10 = arith.constant 0 : index
    %12 = vector.load %arg5[%c0_9, %c0_10] : memref<1x128xf32, #tpu.memory_space<vmem>>, vector<1x128xf32>
    %13 = vector.broadcast %12 : vector<1x128xf32> to vector<16x128xf32>
    %14 = arith.addf %11, %13 : vector<16x128xf32>
    %cst_11 = arith.constant 0.000000e+00 : f32
    %15 = vector.broadcast %cst_11 : f32 to vector<16x128xf32>
    %16 = arith.maximumf %14, %15 : vector<16x128xf32>
    %17 = arith.truncf %16 : vector<16x128xf32> to vector<16x128xbf16>
    %c0_12 = arith.constant 0 : index
    %c0_13 = arith.constant 0 : index
    %18 = vector.load %arg6[%c0_12, %c0_13] : memref<128x128xbf16, #tpu.memory_space<vmem>>, vector<128x128xbf16>
    %cst_14 = arith.constant dense<0.000000e+00> : vector<16x128xf32>
    %19 = tpu.matmul %17, %18, %cst_14 {dimension_numbers = #tpu.dot_dimension_numbers<[1], [0], [0], [1], [0, 0, 1, 1], [], []>} : vector<16x128xbf16>, vector<128x128xbf16>, vector<16x128xf32> -> vector<16x128xf32>
    %c0_15 = arith.constant 0 : index
    %c0_16 = arith.constant 0 : index
    %20 = vector.load %arg7[%c0_15, %c0_16] : memref<1x128xf32, #tpu.memory_space<vmem>>, vector<1x128xf32>
    %21 = vector.broadcast %20 : vector<1x128xf32> to vector<16x128xf32>
    %22 = arith.addf %19, %21 : vector<16x128xf32>
    %c0_17 = arith.constant 0 : index
    %c0_18 = arith.constant 0 : index
    %23 = vector.load %arg8[%c0_17, %c0_18] : memref<16x128xf32, #tpu.memory_space<vmem>>, vector<16x128xf32>
    tpu.vector_store %arg8[%c0_17, %c0_18], %22 {strides = array<i32>} : memref<16x128xf32, #tpu.memory_space<vmem>>, vector<16x128xf32>,
    return
  }
  func.func @transform_0(%arg0: i32) -> (i32, i32) {
    %c0_i32 = arith.constant 0 : i32
    %c0_i32_0 = arith.constant 0 : i32
    return %arg0, %c0_i32 : i32, i32
  }
  func.func @transform_1(%arg0: i32) -> (i32, i32) {
    %c0_i32 = arith.constant 0 : i32
    %c0_i32_0 = arith.constant 0 : i32
    %c0_i32_1 = arith.constant 0 : i32
    return %c0_i32, %c0_i32_0 : i32, i32
  }
  func.func @transform_2(%arg0: i32) -> (i32, i32) {
    %c0_i32 = arith.constant 0 : i32
    %c0_i32_0 = arith.constant 0 : i32
    %c0_i32_1 = arith.constant 0 : i32
    return %c0_i32, %c0_i32_0 : i32, i32
  }
  func.func @transform_3(%arg0: i32) -> (i32, i32) {
    %c0_i32 = arith.constant 0 : i32
    %c0_i32_0 = arith.constant 0 : i32
    %c0_i32_1 = arith.constant 0 : i32
    return %c0_i32, %c0_i32_0 : i32, i32
  }
  func.func @transform_4(%arg0: i32) -> (i32, i32) {
    %c0_i32 = arith.constant 0 : i32
    %c0_i32_0 = arith.constant 0 : i32
    %c0_i32_1 = arith.constant 0 : i32
    return %c0_i32, %c0_i32_0 : i32, i32
  }
  func.func @transform_5(%arg0: i32) -> (i32, i32) {
    %c0_i32 = arith.constant 0 : i32
    %c0_i32_0 = arith.constant 0 : i32
    %c0_i32_1 = arith.constant 0 : i32
    return %c0_i32, %c0_i32_0 : i32, i32
  }
  func.func @transform_6(%arg0: i32) -> (i32, i32) {
    %c0_i32 = arith.constant 0 : i32
    %c0_i32_0 = arith.constant 0 : i32
    %c0_i32_1 = arith.constant 0 : i32
    return %c0_i32, %c0_i32_0 : i32, i32
  }
  func.func @transform_7(%arg0: i32) -> (i32, i32) {
    %c0_i32 = arith.constant 0 : i32
    %c0_i32_0 = arith.constant 0 : i32
    return %arg0, %c0_i32 : i32, i32
  }
}

</mosaic_0001>

<bundles_post_ra>
// kernel: mlp_forward.1
= control target key start
LH: loop header
LB: loop body
LE: loop exit
PB: predicated region body
PF: predicated region fallthrough
CT: control target
= control target key end

     0   :  { %12 = vsyncpa [#allocation3], 0  ;;  %v1157_v41 = vmov 0.0   ;;  %vm1158_vm0 = vmmov 0   ;;  %vm448_vm1 = vcmask 130048   ;;  %s1474_s0 = inlined_call_operand.vmem [shape: f32[8,784], index: 0, kind: input, shape index: {}]   ;;  %s1475_s1 = inlined_call_operand.vmem [shape: bf16[784,128], index: 1, kind: input, shape index: {}]   ;;  %s1476_s2 = inlined_call_operand.vmem [shape: f32[1,128], index: 2, kind: input, shape index: {}]   ;;  %s1477_s3 = inlined_call_operand.vmem [shape: bf16[128,128], index: 3, kind: input, shape index: {}]   ;;  %s1478_s4 = inlined_call_operand.vmem [shape: f32[1,128], index: 4, kind: input, shape index: {}]   ;;  %s1479_s5 = inlined_call_operand.vmem [shape: bf16[128,128], index: 5, kind: input, shape index: {}]   ;;  %s1480_s6 = inlined_call_operand.vmem [shape: f32[1,128], index: 6, kind: input, shape index: {}]   ;;  %s1481_s7 = inlined_call_operand.hbm [shape: f32[8,128], index: 7, kind: output, shape index: {}]  }
   0x1   :  { %v1070_v0 = vld [vmem:[%s1475_s1 + $0x78] sm:$0xff]   ;;  %v1074_v4 = vld [vmem:[%s1475_s1 + $0x70] sm:$0xff]   ;;  %v1078_v8 = vld [vmem:[%s1475_s1 + $0x68] sm:$0xff]  }
   0x2   :  { %v1071_v1 = vld [vmem:[%s1475_s1 + $0x38] sm:$0xff]   ;;  %933 = vmatprep.subr.bf16.mxu0 %v1070_v0  ;;  %v1075_v5 = vld [vmem:[%s1475_s1 + $0x30] sm:$0xff]   ;;  %v1079_v9 = vld [vmem:[%s1475_s1 + $0x28] sm:$0xff]  }
   0x3   :  { %v1072_v2 = vld [vmem:[%s1475_s1 + $0xf8] sm:$0xff]   ;;  %934 = vmatpush3.bf16.msra.mxu0 %v1071_v1  ;;  %v1076_v6 = vld [vmem:[%s1475_s1 + $0xf0] sm:$0xff]   ;;  %v1080_v10 = vld [vmem:[%s1475_s1 + $0xe8] sm:$0xff]  }
   0x4   :  { %v1073_v3 = vld [vmem:[%s1475_s1 + $0xb8] sm:$0xff]   ;;  %955 = vmatprep.subr.bf16.mxu1 %v1072_v2  ;;  %935 = vmatprep.subr.bf16.mxu0 %v1074_v4  ;;  %v1077_v7 = vld [vmem:[%s1475_s1 + $0xb0] sm:$0xff]   ;;  %v1081_v11 = vld [vmem:[%s1475_s1 + $0xa8] sm:$0xff]  }
   0x5   :  { %956 = vmatpush3.bf16.msra.mxu1 %v1073_v3  ;;  %v1082_v12 = vld [vmem:[%s1475_s1 + $0x60] sm:$0xff]   ;;  %v1086_v16 = vld [vmem:[%s1475_s1 + $0x58] sm:$0xff]   ;;  %v1090_v20 = vld [vmem:[%s1475_s1 + $0x50] sm:$0xff]  }
   0x6   :  { %957 = vmatprep.subr.bf16.mxu1 %v1076_v6  ;;  %v1083_v13 = vld [vmem:[%s1475_s1 + $0x20] sm:$0xff]   ;;  %v1087_v17 = vld [vmem:[%s1475_s1 + $0x18] sm:$0xff]   ;;  %v1091_v21 = vld [vmem:[%s1475_s1 + $0x10] sm:$0xff]  }
   0x7   :  { %936 = vmatpush3.bf16.msra.mxu0 %v1075_v5  ;;  %v1084_v14 = vld [vmem:[%s1475_s1 + $0xe0] sm:$0xff]   ;;  %v1088_v18 = vld [vmem:[%s1475_s1 + $0xd8] sm:$0xff]   ;;  %v1092_v22 = vld [vmem:[%s1475_s1 + $0xd0] sm:$0xff]  }
   0x8   :  { %937 = vmatprep.subr.bf16.mxu0 %v1078_v8  ;;  %v1085_v15 = vld [vmem:[%s1475_s1 + $0xa0] sm:$0xff]   ;;  %v1089_v19 = vld [vmem:[%s1475_s1 + $0x98] sm:$0xff]   ;;  %v1093_v23 = vld [vmem:[%s1475_s1 + $0x90] sm:$0xff]  }
   0x9   :  { %958 = vmatpush3.bf16.msra.mxu1 %v1077_v7  ;;  %v1094_v24 = vld [vmem:[%s1475_s1 + $0x48] sm:$0xff]   ;;  %v1098_v28 = vld [vmem:[%s1475_s1 + $0x40] sm:$0xff]   ;;  %v35_v36 = vld [vmem:[%s1474_s0 + $0x38] sm:$0xff] }
   0xa   :  { %959 = vmatprep.subr.bf16.mxu1 %v1080_v10  ;;  %v1095_v25 = vld [vmem:[%s1475_s1 + $0x8] sm:$0xff]   ;;  %v1099_v29 = vld [vmem:[%s1475_s1] sm:$0xff]   ;;  %v1102_v38 = vld [vmem:[%s1475_s1 + $0x178] sm:$0xff]  }
   0xb   :  { %938 = vmatpush3.bf16.msra.mxu0 %v1079_v9  ;;  %v1096_v26 = vld [vmem:[%s1475_s1 + $0xc8] sm:$0xff]   ;;  %v1100_v30 = vld [vmem:[%s1475_s1 + $0xc0] sm:$0xff]   ;;  %v31_v39 = vld [vmem:[%s1474_s0 + $0x18] sm:$0xff] }
   0xc   :  { %939 = vmatprep.subr.bf16.mxu0 %v1082_v12  ;;  %v1097_v27 = vld [vmem:[%s1475_s1 + $0x88] sm:$0xff]   ;;  %v36_v32 = vld [vmem:[%s1474_s0 + $0x40] sm:$0xff]  ;;  %v38_v40 = vld [vmem:[%s1474_s0 + $0x50] sm:$0xff] }
   0xd   :  { %960 = vmatpush3.bf16.msra.mxu1 %v1081_v11  ;;  %v29_v31 = vld [vmem:[%s1474_s0 + $0x8] sm:$0xff]  ;;  %v1101_v34 = vld [vmem:[%s1475_s1 + $0x80] sm:$0xff]   ;;  %v45_v42 = vpack.c.bf16 %v38_v40, %v31_v39  ;;  %v1103_v43 = vld [vmem:[%s1475_s1 + $0x138] sm:$0xff]  }
   0xe   :  { %961 = vmatprep.subr.bf16.mxu1 %v1084_v14  ;;  %v43_v33 = vpack.c.bf16 %v36_v32, %v29_v31  ;;  %v28_v35 = vld [vmem:[%s1474_s0] sm:$0xff]  ;;  %v30_v44 = vld [vmem:[%s1474_s0 + $0x10] sm:$0xff]  ;;  %v37_v45 = vld [vmem:[%s1474_s0 + $0x48] sm:$0xff] }
   0xf   :  { %940 = vmatpush3.bf16.msra.mxu0 %v1083_v13  ;;  %v42_v37 = vpack.c.bf16 %v35_v36, %v28_v35  ;;  %v44_v46 = vpack.c.bf16 %v37_v45, %v30_v44  ;;  %v1104_v47 = vld [vmem:[%s1475_s1 + $0x170] sm:$0xff]   ;;  %525 = vmatprep.mubr.bf16.mxu1 %v45_v42  ;;  %v1106_v49 = vld [vmem:[%s1475_s1 + $0x168] sm:$0xff]   ;;  %v1108_v51 = vld [vmem:[%s1475_s1 + $0x160] sm:$0xff]  }
  0x10   :  { %941 = vmatprep.subr.bf16.mxu0 %v1086_v16  ;;  %484 = vmatprep.mubr.bf16.mxu0 %v43_v33  ;;  %v1105_v48 = vld [vmem:[%s1475_s1 + $0x130] sm:$0xff]   ;;  %v1107_v50 = vld [vmem:[%s1475_s1 + $0x128] sm:$0xff]   ;;  %v1109_v52 = vld [vmem:[%s1475_s1 + $0x120] sm:$0xff]  }
  0x11   :  { %962 = vmatpush3.bf16.msra.mxu1 %v1085_v15  ;;  %v1110_v53 = vld [vmem:[%s1475_s1 + $0x158] sm:$0xff]   ;;  %v1112_v55 = vld [vmem:[%s1475_s1 + $0x150] sm:$0xff]   ;;  %v1118_v56 = vld [vmem:[%s1475_s1 + $0x180] sm:$0xff]  }
  0x12   :  { %963 = vmatprep.subr.bf16.mxu1 %v1088_v18  ;;  %v1111_v54 = vld [vmem:[%s1475_s1 + $0x118] sm:$0xff]   ;;  %v1113_v57 = vld [vmem:[%s1475_s1 + $0x110] sm:$0xff]   ;;  %v33_v58 = vld [vmem:[%s1474_s0 + $0x28] sm:$0xff] }
  0x13   :  { %942 = vmatpush3.bf16.msra.mxu0 %v1087_v17  ;;  %v40_v59 = vld [vmem:[%s1474_s0 + $0x60] sm:$0xff]  ;;  %v1114_v60 = vld [vmem:[%s1475_s1 + $0x148] sm:$0xff]   ;;  %v34_v62 = vld [vmem:[%s1474_s0 + $0x30] sm:$0xff] }
  0x14   :  { %943 = vmatprep.subr.bf16.mxu0 %v1090_v20  ;;  %v47_v61 = vpack.c.bf16 %v40_v59, %v33_v58  ;;  %v41_v63 = vld [vmem:[%s1474_s0 + $0x68] sm:$0xff]  ;;  %v1116_v2 = vld [vmem:[%s1475_s1 + $0x140] sm:$0xff]   ;;  %v39_v5 = vld [vmem:[%s1474_s0 + $0x58] sm:$0xff] }
  0x15   :  { %964 = vmatpush3.bf16.msra.mxu1 %v1089_v19  ;;  %v48_v0 = vpack.c.bf16 %v41_v63, %v34_v62  ;;  %v1115_v1 = vld [vmem:[%s1475_s1 + $0x108] sm:$0xff]   ;;  %v1117_v3 = vld [vmem:[%s1475_s1 + $0x100] sm:$0xff]   ;;  %v1119_v7 = vld [vmem:[%s1477_s3 + $0x38] sm:$0xff]  }
  0x16   :  { %965 = vmatprep.subr.bf16.mxu1 %v1092_v22  ;;  %v32_v4 = vld [vmem:[%s1474_s0 + $0x20] sm:$0xff]  ;;  %v1120_v8 = vld [vmem:[%s1477_s3 + $0x30] sm:$0xff]   ;;  %v1121_v9 = vld [vmem:[%s1477_s3 + $0x28] sm:$0xff]  }
  0x17   :  { %944 = vmatpush3.bf16.msra.mxu0 %v1091_v21  ;;  %v46_v6 = vpack.c.bf16 %v39_v5, %v32_v4  ;;  %v1122_v10 = vld [vmem:[%s1477_s3 + $0x20] sm:$0xff]   ;;  %v1123_v11 = vld [vmem:[%s1477_s3 + $0x18] sm:$0xff]   ;;  %v1124_v12 = vld [vmem:[%s1477_s3 + $0x10] sm:$0xff]  }
  0x18   :  { %945 = vmatprep.subr.bf16.mxu0 %v1094_v24  ;;  %v1125_v13 = vld [vmem:[%s1477_s3 + $0x8] sm:$0xff]   ;;  %v1126_v14 = vld [vmem:[%s1477_s3] sm:$0xff]   ;;  %v1127_v15 = vld [vmem:[%s1479_s5 + $0x38] sm:$0xff]  }
  0x19   :  { %966 = vmatpush3.bf16.msra.mxu1 %v1093_v23  ;;  %v1128_v16 = vld [vmem:[%s1479_s5 + $0x30] sm:$0xff]   ;;  %v1129_v17 = vld [vmem:[%s1479_s5 + $0x28] sm:$0xff]   ;;  %v1130_v18 = vld [vmem:[%s1479_s5 + $0x20] sm:$0xff]  }
  0x1a   :  { %967 = vmatprep.subr.bf16.mxu1 %v1096_v26  ;;  %v1131_v19 = vld [vmem:[%s1479_s5 + $0x18] sm:$0xff]   ;;  %v864_v32 = vld [vmem:[%s1476_s2] ss:$0 sm:$0xff] }
  0x1b   :  { %946 = vmatpush3.bf16.msra.mxu0 %v1095_v25  ;;  %v915_v58 = vld [vmem:[%s1478_s4] ss:$0 sm:$0xff] }
  0x1c   :  { %947 = vmatprep.subr.bf16.mxu0 %v1098_v28 }
  0x1d   :  { %968 = vmatpush3.bf16.msra.mxu1 %v1097_v27 }
  0x1e   :  { %969 = vmatprep.subr.bf16.mxu1 %v1100_v30 }
  0x1f   :  { %948 = vmatpush3.bf16.msra.mxu0 %v1099_v29 }
  0x20   :  { %977 = vmatprep.subr.bf16.mxu0 %v1102_v38 }
  0x21   :  { %970 = vmatpush3.bf16.msra.mxu1 %v1101_v34 }
  0x22   :  { %1019 = vmatprep.subr.bf16.mxu1 %v1157_v41  ;;  %485 = vmatmul.mubr.bf16.vlgmr.msra.gmra.mxu0 %v42_v37 }
  0x23   :  { %978 = vmatpush3.bf16.msra.mxu0 %v1103_v43  ;;  %566 = vmatprep.mubr.bf16.mxu0 %v47_v61 }
  0x24   :  { %526 = vmatmul.mubr.bf16.vlgmr.msra.gmra.mxu1 %v44_v46  ;;  %979 = vmatprep.subr.bf16.mxu0 %v1104_v47 }
  0x25   :  { %1021 = vmatprep.mubr.msk.bf16.mxu1 %vm1158_vm0, %v1157_v41  ;;  %1020 = vmatpush3.bf16.msra.mxu1 %v1118_v56  ;;  %v1133_v56 = vld [vmem:[%s1479_s5 + $0x8] sm:$0xff]  }
  0x26   :  { %1025 = vmatprep.subr.bf16.mxu1 %v1157_v41 }
  0x27   :  { %980 = vmatpush3.bf16.msra.mxu0 %v1105_v48 }
  0x28   :  { %981 = vmatprep.subr.bf16.mxu0 %v1106_v49 }
  0x2b   :  { %982 = vmatpush3.bf16.msra.mxu0 %v1107_v50 }
  0x2c   :  { %983 = vmatprep.subr.bf16.mxu0 %v1108_v51  ;;  %1022 = vmatmul.mubr.msk.bf16.vlgmr.msra.gmra.mxu1 %vm448_vm1, %v48_v0 }
  0x2d   :  { %1041 = vmatprep.mubr.msk.bf16.mxu1 %vm1158_vm0, %v1157_v41  ;;  %1026 = vmatpush3.bf16.msra.mxu1 %v1119_v7 }
  0x2e   :  { %1027 = vmatprep.subr.bf16.mxu1 %v1157_v41 }
  0x2f   :  { %984 = vmatpush3.bf16.msra.mxu0 %v1109_v52 }
  0x30   :  { %985 = vmatprep.subr.bf16.mxu0 %v1110_v53 }
  0x31   :  { %1028 = vmatpush3.bf16.msra.mxu1 %v1120_v8 }
  0x32   :  { %1029 = vmatprep.subr.bf16.mxu1 %v1157_v41 }
  0x33   :  { %986 = vmatpush3.bf16.msra.mxu0 %v1111_v54 }
  0x34   :  { %987 = vmatprep.subr.bf16.mxu0 %v1112_v55  ;;  %v1132_v55 = vld [vmem:[%s1479_s5 + $0x10] sm:$0xff]  }
  0x35   :  { %1030 = vmatpush3.bf16.msra.mxu1 %v1121_v9 }
  0x36   :  { %1031 = vmatprep.subr.bf16.mxu1 %v1157_v41 }
  0x37   :  { %988 = vmatpush3.bf16.msra.mxu0 %v1113_v57  ;;  %v1134_v57 = vld [vmem:[%s1479_s5] sm:$0xff]  }
  0x38   :  { %989 = vmatprep.subr.bf16.mxu0 %v1114_v60 }
  0x39   :  { %1032 = vmatpush3.bf16.msra.mxu1 %v1122_v10 }
  0x3a   :  { %1033 = vmatprep.subr.bf16.mxu1 %v1157_v41 }
  0x3b   :  { %990 = vmatpush3.bf16.msra.mxu0 %v1115_v1 }
  0x3c   :  { %991 = vmatprep.subr.bf16.mxu0 %v1116_v2 }
  0x3d   :  { %1034 = vmatpush3.bf16.msra.mxu1 %v1123_v11 }
  0x3e   :  { %1035 = vmatprep.subr.bf16.mxu1 %v1157_v41 }
  0x3f   :  { %992 = vmatpush3.bf16.msra.mxu0 %v1117_v3 }
  0x40   :  { %1045 = vmatprep.subr.bf16.mxu0 %v1157_v41 }
  0x41   :  { %1036 = vmatpush3.bf16.msra.mxu1 %v1124_v12 }
  0x42   :  { %567 = vmatmul.mubr.bf16.vlgmr.msra.gmra.mxu0 %v46_v6  ;;  %1037 = vmatprep.subr.bf16.mxu1 %v1157_v41 }
  0x43   :  { %1061 = vmatprep.mubr.msk.bf16.mxu0 %vm1158_vm0, %v1157_v41  ;;  %1046 = vmatpush3.bf16.msra.mxu0 %v1127_v15 }
  0x44   :  { %1047 = vmatprep.subr.bf16.mxu0 %v1157_v41 }
  0x45   :  { %1038 = vmatpush3.bf16.msra.mxu1 %v1125_v13 }
  0x46   :  { %1039 = vmatprep.subr.bf16.mxu1 %v1157_v41 }
  0x47   :  { %1048 = vmatpush3.bf16.msra.mxu0 %v1128_v16 }
  0x48   :  { %1049 = vmatprep.subr.bf16.mxu0 %v1157_v41 }
  0x49   :  { %1040 = vmatpush3.bf16.msra.mxu1 %v1126_v14 }
  0x4b   :  { %1050 = vmatpush3.bf16.msra.mxu0 %v1129_v17 }
  0x4c   :  { %1051 = vmatprep.subr.bf16.mxu0 %v1157_v41 }
  0x4f   :  { %1052 = vmatpush3.bf16.msra.mxu0 %v1130_v18 }
  0x50   :  { %1053 = vmatprep.subr.bf16.mxu0 %v1157_v41 }
  0x53   :  { %1054 = vmatpush3.bf16.msra.mxu0 %v1131_v19 }
  0x54   :  { %1055 = vmatprep.subr.bf16.mxu0 %v1157_v41 }
  0x57   :  { %1056 = vmatpush3.bf16.msra.mxu0 %v1132_v55 }
  0x58   :  { %1057 = vmatprep.subr.bf16.mxu0 %v1157_v41 }
  0x5b   :  { %1058 = vmatpush3.bf16.msra.mxu0 %v1133_v56 }
  0x5c   :  { %1059 = vmatprep.subr.bf16.mxu0 %v1157_v41  ;;  %v924_v41 = vld [vmem:[%s1480_s6] ss:$0 sm:$0xff] }
  0x5f   :  { %1060 = vmatpush3.bf16.msra.mxu0 %v1134_v57 }
  0xe2   :  { %v949_v23 = vpop.f32.mrf.mxu0 }
  0xe4   :  { %v971_v20 = vpop.f32.mrf.mxu1  ;;  %v950_v26 = vpop.f32.mrf.mxu0 }
  0xe5   :  { %v951_v31 = vadd.f32 %v950_v26, %v949_v23 }
  0xe6   :  { %v972_v21 = vpop.f32.mrf.mxu1  ;;  %v952_v29 = vpop.f32.mrf.mxu0 }
  0xe7   :  { %v487_v34 = vadd.f32 %v951_v31, %v864_v32  ;;  %v973_v35 = vadd.f32 %v972_v21, %v971_v20 }
  0xe8   :  { %v974_v22 = vpop.f32.mrf.mxu1  ;;  %v953_v33 = vpop.f32.mrf.mxu0 }
  0xe9   :  { %v954_v36 = vadd.f32 %v953_v33, %v952_v29  ;;  %v528_v39 = vadd.f32 %v973_v35, %v487_v34 }
  0xea   :  { %v975_v24 = vpop.f32.mrf.mxu1 }
  0xeb   :  { %v490_v40 = vadd.f32 %v954_v36, %v864_v32  ;;  %v976_v42 = vadd.f32 %v975_v24, %v974_v22 }
  0xec   :  { %v609_v25 = vpop.f32.mrf.mxu1 }
  0xed   :  { %v531_v47 = vadd.f32 %v976_v42, %v490_v40 }
  0xee   :  { %v1023_v27 = vpop.f32.mrf.mxu1 }
  0xf0   :  { %v612_v28 = vpop.f32.mrf.mxu1 }
  0xf2   :  { %v1024_v30 = vpop.f32.mrf.mxu1 }
 0x102   :  { %v993_v37 = vpop.f32.mrf.mxu0 }
 0x104   :  { %v994_v38 = vpop.f32.mrf.mxu0 }
 0x105   :  { %v995_v43 = vadd.f32 %v994_v38, %v993_v37 }
 0x106   :  { %v996_v44 = vpop.f32.mrf.mxu0 }
 0x107   :  { %v569_v45 = vadd.f32 %v995_v43, %v528_v39 }
 0x108   :  { %v997_v46 = vpop.f32.mrf.mxu0 }
 0x109   :  { %v998_v48 = vadd.f32 %v997_v46, %v996_v44  ;;  %v610_v49 = vadd.f32 %v609_v25, %v569_v45 }
 0x10b   :  { %v572_v50 = vadd.f32 %v998_v48, %v531_v47  ;;  %v616_v52 = vmax.f32 %v610_v49, 0.0 }
 0x10d   :  { %v613_v51 = vadd.f32 %v612_v28, %v572_v50 }
 0x10f   :  { %v617_v53 = vmax.f32 %v613_v51, 0.0 }
 0x111   :  { %v618_v54 = vpack.c.bf16 %v617_v53, %v616_v52 }
 0x113   :  { %1042 = vmatmul.mubr.bf16.vlgmr.msra.gmra.mxu1 %v618_v54 }
 0x1d3   :  { %v724_v59 = vpop.f32.mrf.mxu1 }
 0x1d4   :  { %v725_v61 = vadd.f32 %v915_v58, %v724_v59 }
 0x1d5   :  { %v1043_v60 = vpop.f32.mrf.mxu1 }
 0x1d6   :  { %v731_v1 = vmax.f32 %v725_v61, 0.0 }
 0x1d7   :  { %v727_v62 = vpop.f32.mrf.mxu1 }
 0x1d8   :  { %v728_v63 = vadd.f32 %v915_v58, %v727_v62 }
 0x1d9   :  { %v1044_v0 = vpop.f32.mrf.mxu1 }
 0x1da   :  { %v732_v2 = vmax.f32 %v728_v63, 0.0 }
 0x1dc   :  { %v733_v3 = vpack.c.bf16 %v732_v2, %v731_v1 }
 0x1de   :  { %1062 = vmatmul.mubr.bf16.vlgmr.msra.gmra.mxu0 %v733_v3 }
 0x29e   :  { %v839_v4 = vpop.f32.mrf.mxu0 }
 0x29f   :  { %v840_v5 = vadd.f32 %v924_v41, %v839_v4 }
 0x2a0   :  { %v1063_v6 = vpop.f32.mrf.mxu0 }
 0x2a1   :  { %846 = vst [vmem:[#allocation2] sm:$0xff] %v840_v5 }
 0x2a2   :  { %v842_v7 = vpop.f32.mrf.mxu0 }
 0x2a3   :  { %v843_v8 = vadd.f32 %v924_v41, %v842_v7 }
 0x2a4   :  { %v1064_v9 = vpop.f32.mrf.mxu0 }
 0x2a5   :  { %847 = vst [vmem:[#allocation2 + $0x8] sm:$0xff] %v843_v8 }
 0x2a6   :  { %852 = vsyncadd [#allocation3], 128  ;;  %s1159_s4 = smov [#allocation2]  }
 0x2a7   :  { %s853_s5 = sshll.u32 %s1159_s4, 4  ;;  %s854_s5 = int_to_ptr.vmem [resolvable:$true] %s853_s5 }
 0x2a8   :  { %s1135_s21 = scalar_lea.vmem %s854_s5, 128  ;;  %s1139_s22 = scalar_lea.vmem %s854_s5, 256 }
 0x2a9   :  { %p1136_p0 = scmp.ne.s32.totalorder %s854_s5, %s1135_s21  ;;  %p1140_p1 = scmp.lt.s32.totalorder %s854_s5, %s854_s5 }
 0x2aa   :  { %p1141_p2 = scmp.lt.s32.totalorder %s1139_s22, %s1135_s21 }
 0x2ac   :  { %p1142_p3 = por %p1141_p2, %p1140_p1 }
 0x2ae   :  { %p1143_p4 = pnand %p1142_p3, %p1136_p0 }
 0x2b0   :  { %1146 = shalt.err (!%p1143_p4)
}
 0x2b1   :  { %s1160_s6 = smov 128   ;;  %s1161_s23 = smov 8  }
 0x2b2   :  { %859 = dma.vmem_to_hbm [thread:$0]  %s854_s5, 128, %s1481_s7, [#allocation3], %s1160_s6, %s1160_s6, %s1161_s23  }
 0x2b3   :  { %1155 = dma.done.wait [#allocation3], 256  }
 0x2b4   :  { %1156 = vsyncadd [#allocation3], 4294967040 }
 0x2b5   :  { %863 = vsyncpa [#allocation3], 1 }

</bundles_post_ra>
